<compile_context>
chip_gen: v7x
topology: tpu7x:2x2x1
jax: 0.10.0
libtpu: 0.0.40
codegen_flags: <defaults>
</compile_context>

<pallas_src>
import jax
import jax.numpy as jnp
from jax.experimental import pallas as pl
from jax.experimental.pallas import tpu as pltpu


def _loss_cost_sensitive_kernel(data_ref, sel_ref, cost_ref, out_ref):
    data = data_ref[...]          # (N, C) f32 logits
    sel = sel_ref[...]            # (N, 1) f32 pre-gathered data[i, target[i]]
    cost = cost_ref[...]          # (N, C) f32 pre-gathered c.T[target]

    n = data.shape[0]

    # --- numerically stable shared softmax pieces (all 2-D, keepdims) ---
    m = jnp.max(data, axis=1, keepdims=True)            # (N, 1)
    ez = jnp.exp(data - m)                               # (N, C)
    se = jnp.sum(ez, axis=1, keepdims=True)              # (N, 1)

    # --- l1 per row: -log p[target] = log(se) + m - sel              (N, 1)
    # --- l2 per row: sum_j softmax_ij * cost_ij = sum(ez*cost) / se  (N, 1)
    inv_se = pl.reciprocal(se, approx=False)             # exact; tiny column
    row = (jnp.log(se) + m - sel) \
        + jnp.sum(ez * cost, axis=1, keepdims=True) * inv_se

    # Single merged reduction + single scale by 1/N, scalar store to SMEM.
    out_ref[0] = jnp.sum(row) * (1.0 / n)


def loss_cost_sensitive(data, target, c):
    """Pallas implementation of Loss_cost_sensitive.forward.

    data:   (N, C) float logits
    target: (N,)   int class labels
    c:      (C, C) cost matrix (columns indexed by target, like the torch code)
    """
    data = jnp.asarray(data, jnp.float32)
    n, _ = data.shape
    target = jnp.asarray(target, jnp.int32)
    c = jnp.asarray(c, jnp.float32)

    # Glue (layout plumbing only, fuses in XLA):
    #   c[:, target].T == c.T[target]                 -> (N, C)
    #   sel[i] = data[i, target[i]]                   -> (N, 1)
    cost_rows = c.T[target]
    sel = jnp.take_along_axis(data, target[:, None], axis=1)

    out = pl.pallas_call(
        _loss_cost_sensitive_kernel,
        out_shape=jax.ShapeDtypeStruct((1,), jnp.float32),
        in_specs=[
            pl.BlockSpec(data.shape, lambda: (0, 0)),
            pl.BlockSpec(sel.shape, lambda: (0, 0)),
            pl.BlockSpec(cost_rows.shape, lambda: (0, 0)),
        ],
        out_specs=pl.BlockSpec(memory_space=pltpu.MemorySpace.SMEM),
    )(data, sel, cost_rows)
    return out[0]


loss_cost_sensitive_jit = jax.jit(loss_cost_sensitive)


def _loss_cost_sensitive_ref(data, target, c):
    """Pure-JAX reference for validation."""
    data = jnp.asarray(data, jnp.float32)
    logp = jax.nn.log_softmax(data, axis=1)
    l1 = -jnp.mean(logp[jnp.arange(data.shape[0]), target])
    p = jax.nn.softmax(data, axis=1)
    cost_sensitive = jnp.asarray(c, jnp.float32)[:, target].T
    l2 = jnp.mean(jnp.sum(p * cost_sensitive, axis=1))
    return l1 + l2


if __name__ == "__main__":
    key = jax.random.PRNGKey(0)
    k_data, k_tgt, k_cost = jax.random.split(key, 3)

    N, C = 8, 10                      # batch of 8, 10 MNIST classes
    data = jax.random.normal(k_data, (N, C), dtype=jnp.float32)
    target = jax.random.randint(k_tgt, (N,), 0, C, dtype=jnp.int32)
    cost = jax.random.uniform(k_cost, (C, C), dtype=jnp.float32)

    out = loss_cost_sensitive_jit(data, target, cost)
    out = jax.block_until_ready(out)

    ref = _loss_cost_sensitive_ref(data, target, cost)
    assert jnp.allclose(out, ref, rtol=1e-4, atol=1e-4), (out, ref)

    print("KERNEL_OK")
</pallas_src>

<mosaic_0001>
module attributes {stable_mosaic.version = 11 : i64} {
  func.func @_loss_cost_sensitive_kernel(%arg0: memref<8x10xf32, #tpu.memory_space<vmem>>, %arg1: memref<8x1xf32, #tpu.memory_space<vmem>>, %arg2: memref<8x10xf32, #tpu.memory_space<vmem>>, %arg3: memref<1xf32, #tpu.memory_space<smem>>) attributes {dimension_semantics = [], scalar_prefetch = 0 : i64, scratch_operands = 0 : i64, tpu.core_type = #tpu.core_type<tc>} {
    %c0 = arith.constant 0 : index
    %c0_0 = arith.constant 0 : index
    %0 = vector.load %arg0[%c0, %c0_0] : memref<8x10xf32, #tpu.memory_space<vmem>>, vector<8x10xf32>
    %c0_1 = arith.constant 0 : index
    %c0_2 = arith.constant 0 : index
    %1 = vector.load %arg1[%c0_1, %c0_2] : memref<8x1xf32, #tpu.memory_space<vmem>>, vector<8x1xf32>
    %c0_3 = arith.constant 0 : index
    %c0_4 = arith.constant 0 : index
    %2 = vector.load %arg2[%c0_3, %c0_4] : memref<8x10xf32, #tpu.memory_space<vmem>>, vector<8x10xf32>
    %cst = arith.constant dense<0xFF800000> : vector<8xf32>
    %3 = vector.multi_reduction <maximumf>, %0, %cst [1] : vector<8x10xf32> to vector<8xf32>
    %4 = vector.shape_cast %3 : vector<8xf32> to vector<8x1xf32>
    %5 = vector.broadcast %4 : vector<8x1xf32> to vector<8x10xf32>
    %6 = arith.subf %0, %5 : vector<8x10xf32>
    %7 = math.exp %6 : vector<8x10xf32>
    %cst_5 = arith.constant dense<0.000000e+00> : vector<8xf32>
    %8 = vector.multi_reduction <add>, %7, %cst_5 [1] : vector<8x10xf32> to vector<8xf32>
    %9 = vector.shape_cast %8 : vector<8xf32> to vector<8x1xf32>
    %10 = tpu.reciprocal %9 : vector<8x1xf32> -> vector<8x1xf32>
    %11 = math.log %9 : vector<8x1xf32>
    %12 = arith.addf %11, %4 : vector<8x1xf32>
    %13 = arith.subf %12, %1 : vector<8x1xf32>
    %14 = arith.mulf %7, %2 : vector<8x10xf32>
    %cst_6 = arith.constant dense<0.000000e+00> : vector<8xf32>
    %15 = vector.multi_reduction <add>, %14, %cst_6 [1] : vector<8x10xf32> to vector<8xf32>
    %16 = vector.shape_cast %15 : vector<8xf32> to vector<8x1xf32>
    %17 = arith.mulf %16, %10 : vector<8x1xf32>
    %18 = arith.addf %13, %17 : vector<8x1xf32>
    %19 = vector.shape_cast %18 : vector<8x1xf32> to vector<1x8x1xf32>
    %cst_7 = arith.constant dense<0.000000e+00> : vector<1xf32>
    %20 = vector.multi_reduction <add>, %19, %cst_7 [1, 2] : vector<1x8x1xf32> to vector<1xf32>
    %21 = vector.shape_cast %20 : vector<1xf32> to vector<1x1x1xf32>
    %22 = vector.extract %21[0, 0, 0] : f32 from vector<1x1x1xf32>
    %cst_8 = arith.constant 1.250000e-01 : f32
    %23 = arith.mulf %22, %cst_8 : f32
    %c0_9 = arith.constant 0 : index
    %24 = memref.load %arg3[%c0_9] : memref<1xf32, #tpu.memory_space<smem>>
    memref.store %23, %arg3[%c0_9] : memref<1xf32, #tpu.memory_space<smem>>
    return
  }
}

</mosaic_0001>

<bundles_post_ra>
// kernel: loss_cost_sensitive.1
= control target key start
LH: loop header
LB: loop body
LE: loop exit
PB: predicated region body
PF: predicated region fallthrough
CT: control target
= control target key end

     0   :  { %vm18_vm0 = vcmask 80896   ;;  %s129_s0 = inlined_call_operand.vmem [shape: f32[8,10], index: 0, kind: input, shape index: {}]   ;;  %s130_s1 = inlined_call_operand.vmem [shape: f32[8,1], index: 1, kind: input, shape index: {}]   ;;  %s131_s2 = inlined_call_operand.vmem [shape: f32[8,10], index: 2, kind: input, shape index: {}]   ;;  %s132_s3 = inlined_call_operand.hbm [shape: f32[1], index: 3, kind: output, shape index: {}]  }
   0x1   :  { %v15_v0 = vld [vmem:[%s129_s0] sm:$0xff] }
   0x2   :  { %8 = vsyncpa [#allocation3], 0  ;;  %v19_v1 = vsel %vm18_vm0, %v15_v0, -inf  ;;  %v17_v5 = vld [vmem:[%s131_s2] sm:$0xff]  ;;  %vm39_vm1 = vcmask 7168   ;;  %s75_s19 = scalar_lea.hbm %s132_s3, 16 }
   0x3   :  { %20 = vmax.xlane.f32.xlu0 %v19_v1  ;;  %v16_v14 = vld [vmem:[%s130_s1] sm:$0xff]  ;;  %p76_p0 = scmp.ne.s32.totalorder %s132_s3, %s75_s19  ;;  %p79_p1 = scmp.lt.u32.totalorder %s75_s19, %s132_s3 }
   0x5   :  { %p81_p2 = pnand %p79_p1, %p76_p0 }
  0x90   :  { %v21_v2 = vpop.xlane.xlu0 %20 }
  0x91   :  { %v22_v3 = vsub.f32 %v15_v0, %v21_v2 }
  0x93   :  { %v23_v4 = vmul.f32 1.442695, %v22_v3 }
  0x95   :  { %69 = vpow2.f32 %v23_v4 }
  0x9f   :  { %v70_v6 = vpop.eup %69 }
  0xa0   :  { %v25_v7 = vsel %vm18_vm0, %v70_v6, 0.0  ;;  %v33_v8 = vmul.f32 %v70_v6, %v17_v5 }
  0xa1   :  { %26 = vadd.xlane.f32.xlu0 %v25_v7 }
  0xa2   :  { %v34_v9 = vsel %vm18_vm0, %v33_v8, 0.0 }
  0xa3   :  { %35 = vadd.xlane.f32.xlu1 %v34_v9 }
 0x12e   :  { %v27_v10 = vpop.xlane.xlu0 %26 }
 0x12f   :  { %71 = vlog2.f32 %v27_v10 }
 0x130   :  { %73 = vrcp.f32 %v27_v10  ;;  %v36_v16 = vpop.xlane.xlu1 %35 }
 0x139   :  { %v72_v11 = vpop.eup %71 }
 0x13a   :  { %v30_v12 = vmul.f32 0.6931472, %v72_v11  ;;  %v74_v13 = vpop.eup %73 }
 0x13b   :  { %v37_v17 = vmul.f32 %v74_v13, %v36_v16 }
 0x13c   :  { %v31_v15 = vadd.f32 %v30_v12, %v21_v2 }
 0x13e   :  { %v32_v18 = vsub.f32 %v31_v15, %v16_v14 }
 0x140   :  { %v38_v19 = vadd.f32 %v37_v17, %v32_v18 }
 0x142   :  { %v40_v20 = vsel %vm39_vm1, %v38_v19, 0.0 }
 0x143   :  { %41 = vadd.xlane.f32.xlu1 %v40_v20 }
 0x1d0   :  { %v42_v21 = vpop.xlane.xlu1 %41 }
 0x1d1   :  { %v43_v22 = vrot.slane %v42_v21, 4 }
 0x1d3   :  { %v44_v23 = vadd.f32 %v43_v22, %v42_v21 }
 0x1d5   :  { %v45_v24 = vrot.slane %v44_v23, 2 }
 0x1d7   :  { %v46_v25 = vadd.f32 %v45_v24, %v44_v23 }
 0x1d9   :  { %v47_v26 = vrot.slane %v46_v25, 1 }
 0x1db   :  { %v48_v27 = vadd.f32 %v47_v26, %v46_v25 }
 0x1dd   :  { %66 = vpush %v48_v27 }
 0x20e   :  { %s67_s2 = spop %66 }
 0x20f   :  { %s50_s17 = smul.f32 0.125, %s67_s2 }
 0x211   :  { %52 = sst [smem:[#allocation2]] %s50_s17 }
 0x212   :  { %84 = shalt.err (!%p81_p2)
}
 0x213   :  { %s87_s24 = smov [#allocation2]  }
 0x214   :  { %60 = dma.smem_to_hbm %s87_s24, 16, %s132_s3, [#allocation3]  }
 0x215   :  { %85 = dma.done.wait [#allocation3], 16  }
 0x216   :  { %86 = vsyncadd [#allocation3], 4294967280 }
 0x217   :  { %64 = sfence }
 0x218   :  { %65 = vsyncpa [#allocation3], 1 }

</bundles_post_ra>
